<compile_context>
chip_gen: v5e
topology: v5e:2x2
jax: 0.10.0
libtpu: 0.0.40
codegen_flags: <defaults>
</compile_context>

<pallas_src>
import functools

import jax
import jax.numpy as jnp
from jax.experimental import pallas as pl
from jax.experimental.pallas import tpu as pltpu


# ---------------------------------------------------------------------------
# Generation-aware VMEM configuration.
# ---------------------------------------------------------------------------
def _vmem_config():
    """Returns (stream_budget, vmem_limit, fused_max) in bytes.

    stream_budget: target footprint for the streamed (double-buffered) blocks
                   of one pass.
    vmem_limit:    CompilerParams.vmem_limit_bytes.
    fused_max:     max whole-activation footprint for the fused path.
    """
    cap = 128 << 20
    try:
        cap = int(pltpu.get_tpu_info().vmem_capacity_bytes)
    except Exception:  # not on TPU at trace time / attribute mismatch
        pass
    if cap <= (64 << 20):            # v7x-class: 64 MiB physical per TensorCore
        return 20 << 20, 48 << 20, 20 << 20
    return 32 << 20, 64 << 20, 40 << 20   # v5e / v6e: 128 MiB physical


# ---------------------------------------------------------------------------
# Tile pickers.
# ---------------------------------------------------------------------------
def _c_tile_candidates(C):
    """Divisors of C (< C) that are sublane-aligned (multiples of 8), descending."""
    return [d for d in range(C - 1, 0, -1) if C % d == 0 and d % 8 == 0]


def _round_lanes(t, HW):
    """Legalize a lane-tile request: HW itself (full dim), or a multiple of 128
    in [128, HW)."""
    if HW <= 128 or t >= HW:
        return HW
    return max(128, (min(t, HW) // 128) * 128)


def _pool_tiles(B, C, HW, itemsize, budget):
    """(b_tile, c_tile, hw_tile) for the pooling pass.

    Pass 1 streams only x (double-buffered) plus a tile-wide f32 accumulator,
    so it can take a larger spatial tile than the scale pass within the same
    budget.
    """
    min_lanes = min(HW, 128)

    def per_lane(bt, ct):
        return bt * ct * (2 * itemsize + 4)     # 2x-buffered x tile + f32 acc

    def fits(bt, ct):
        return per_lane(bt, ct) * min_lanes + bt * C * 4 <= budget

    # 2-way batch split gives pass 1 a 'parallel' grid axis so both TensorCores
    # stream HBM on v7x; on single-TC chips it is just two serial sweeps of
    # half the batch (negligible at the large tiles picked below).
    b_tile = B // 2 if (B % 2 == 0 and B > 1) else B
    if not fits(b_tile, C):
        b_tile = 1
    c_tile = C
    if not fits(b_tile, C):
        cands = _c_tile_candidates(C)
        c_tile = next((d for d in cands if fits(b_tile, d)),
                      cands[-1] if cands else C)
    lanes = (budget - b_tile * C * 4) // max(per_lane(b_tile, c_tile), 1)
    return b_tile, c_tile, _round_lanes(max(lanes, min_lanes), HW)


def _scale_tiles(B, C, HW, itemsize, budget):
    """(c_tile, hw_tile) for the scale pass (streams x in + out, 2x-buffered)."""
    min_lanes = min(HW, 128)

    def per_lane(ct):
        return 4 * B * ct * itemsize

    def fits(ct):
        return per_lane(ct) * min_lanes + 2 * B * ct * 4 <= budget

    c_tile = C
    if not fits(C):
        cands = _c_tile_candidates(C)
        c_tile = next((d for d in cands if fits(d)), cands[-1] if cands else C)
    lanes = (budget - 2 * B * c_tile * 4) // max(per_lane(c_tile), 1)
    return c_tile, _round_lanes(max(lanes, min_lanes), HW)


# ---------------------------------------------------------------------------
# Kernel helpers.
# ---------------------------------------------------------------------------
def _excite_mlp(y, w1t_ref, b1_ref, w2t_ref, b2_ref):
    """fc1 -> ReLU -> fc2 -> sigmoid on a (rows, C) f32 matrix of channel means."""
    h = jnp.dot(y, w1t_ref[...], preferred_element_type=jnp.float32) + b1_ref[...]
    h = jnp.maximum(h, 0.0)
    s = jnp.dot(h, w2t_ref[...], preferred_element_type=jnp.float32) + b2_ref[...]
    return jax.nn.sigmoid(s)


def _accumulate_tile(x_ref, acc_ref, k, *, hw_tile, hw_total, masked):
    """acc += x-tile, elementwise (pure VPU adds; the cross-lane XLU reduce is
    deferred to the finalize step).  `masked` zeroes lanes past H*W and is only
    emitted for the ragged last tile."""
    x = x_ref[...].astype(jnp.float32)
    if masked:
        pos = k * hw_tile + jax.lax.broadcasted_iota(jnp.int32, x.shape, 2)
        x = jnp.where(pos < hw_total, x, 0.0)
    acc_ref[...] += x


# ---------------------------------------------------------------------------
# Fused single-kernel path (whole activation resident in VMEM).
# ---------------------------------------------------------------------------
def _se_fused_kernel(x_ref, w1t_ref, b1_ref, w2t_ref, b2_ref, o_ref, *, inv_hw):
    x = x_ref[...]                                            # (B, C, HW)
    y = jnp.sum(x.astype(jnp.float32), axis=2) * inv_hw       # (B, C) channel means
    s = _excite_mlp(y, w1t_ref, b1_ref, w2t_ref, b2_ref)      # (B, C) gate
    if x.dtype == jnp.bfloat16:
        o_ref[...] = x * s.astype(jnp.bfloat16)[:, :, None]
    else:
        o_ref[...] = (x.astype(jnp.float32) * s[:, :, None]).astype(o_ref.dtype)


# ---------------------------------------------------------------------------
# Pass 1a: pool + excite (C untiled).  grid = (batch tiles, spatial tiles).
# ---------------------------------------------------------------------------
def _se_pool_excite_kernel(x_ref, w1t_ref, b1_ref, w2t_ref, b2_ref, s_ref,
                           acc_ref, *, hw_total, hw_tile, inv_hw, ragged):
    k = pl.program_id(1)
    nk = pl.num_programs(1)

    @pl.when(k == 0)
    def _():
        acc_ref[...] = jnp.zeros_like(acc_ref)

    if ragged:
        @pl.when(k == nk - 1)
        def _():
            _accumulate_tile(x_ref, acc_ref, k, hw_tile=hw_tile,
                             hw_total=hw_total, masked=True)

        @pl.when(k < nk - 1)
        def _():
            _accumulate_tile(x_ref, acc_ref, k, hw_tile=hw_tile,
                             hw_total=hw_total, masked=False)
    else:
        _accumulate_tile(x_ref, acc_ref, k, hw_tile=hw_tile,
                         hw_total=hw_total, masked=False)

    @pl.when(k == nk - 1)
    def _():
        y = jnp.sum(acc_ref[...], axis=2) * inv_hw            # (b_tile, C)
        s = _excite_mlp(y, w1t_ref, b1_ref, w2t_ref, b2_ref)  # (b_tile, C)
        s_ref[...] = s[:, :, None].astype(s_ref.dtype)


# ---------------------------------------------------------------------------
# Pass 1b: pool-only, channel-tiled fallback.  grid = (C tiles, spatial tiles).
# ---------------------------------------------------------------------------
def _se_pool_mean_kernel(x_ref, y_ref, acc_ref, *, hw_total, hw_tile, inv_hw,
                         ragged):
    k = pl.program_id(1)
    nk = pl.num_programs(1)

    @pl.when(k == 0)
    def _():
        acc_ref[...] = jnp.zeros_like(acc_ref)

    if ragged:
        @pl.when(k == nk - 1)
        def _():
            _accumulate_tile(x_ref, acc_ref, k, hw_tile=hw_tile,
                             hw_total=hw_total, masked=True)

        @pl.when(k < nk - 1)
        def _():
            _accumulate_tile(x_ref, acc_ref, k, hw_tile=hw_tile,
                             hw_total=hw_total, masked=False)
    else:
        _accumulate_tile(x_ref, acc_ref, k, hw_tile=hw_tile,
                         hw_total=hw_total, masked=False)

    @pl.when(k == nk - 1)
    def _():
        y_ref[...] = (jnp.sum(acc_ref[...], axis=2) * inv_hw)[:, :, None]


# Tiny excitation MLP kernel (used with the channel-tiled pooling fallback).
def _se_excite_kernel(y_ref, w1t_ref, b1_ref, w2t_ref, b2_ref, s_ref):
    s_ref[...] = _excite_mlp(y_ref[...], w1t_ref, b1_ref, w2t_ref, b2_ref)


# ---------------------------------------------------------------------------
# Pass 2: broadcast-multiply the gate over the spatial axis (streaming).
# ---------------------------------------------------------------------------
def _se_scale_kernel(s_ref, x_ref, o_ref):
    x = x_ref[...]                                            # (B, c_tile, hw_tile)
    if x.dtype == jnp.bfloat16:
        # bf16 fast path: halves vreg pressure, no per-element converts.
        o_ref[...] = x * s_ref[...].astype(jnp.bfloat16)
    else:
        o_ref[...] = (x.astype(jnp.float32) * s_ref[...]).astype(o_ref.dtype)


# ---------------------------------------------------------------------------
# Wrapper.
# ---------------------------------------------------------------------------
def se_block(x, w1, b1, w2, b2, *, force_two_pass=False, c_tile=None,
             hw_tile_pool=None, hw_tile_scale=None):
    """SEBlock forward: gate = sigmoid(fc2(relu(fc1(mean_HW(x))))); out = x * gate.

    x: (B, C, H, W).  PyTorch nn.Linear parameter layout:
      w1: (C//r, C), b1: (C//r,)   -- fc1
      w2: (C, C//r), b2: (C,)      -- fc2

    Tile overrides are for testing only and must respect TPU tiling rules:
      hw_tile_*: multiple of 128 (or == H*W); c_tile: multiple of 8 dividing C.
    """
    B, C, H, W = x.shape
    Cr = w1.shape[0]
    HW = H * W
    itemsize = jnp.dtype(x.dtype).itemsize
    inv_hw = 1.0 / HW

    budget, vmem_limit, fused_max = _vmem_config()

    x_flat = x.reshape(B, C, HW)
    # Kernels compute y @ W^T directly: transposed weights, row biases, f32.
    w1t = w1.T.astype(jnp.float32)               # (C, Cr)
    w2t = w2.T.astype(jnp.float32)               # (Cr, C)
    b1r = b1.reshape(1, Cr).astype(jnp.float32)
    b2r = b2.reshape(1, C).astype(jnp.float32)

    # ------------- fused single-kernel path (x resident in VMEM) -------------
    # HBM traffic drops from 3x B*C*HW (read, read, write) to 2x (read, write).
    fused_bytes = B * C * HW * (2 * itemsize + 4)
    if not force_two_pass and fused_bytes <= fused_max:
        out_flat = pl.pallas_call(
            functools.partial(_se_fused_kernel, inv_hw=inv_hw),
            out_shape=jax.ShapeDtypeStruct((B, C, HW), x.dtype),
            compiler_params=pltpu.CompilerParams(vmem_limit_bytes=vmem_limit),
            cost_estimate=pl.CostEstimate(
                flops=int(2 * B * C * HW + 4 * B * C * Cr),
                transcendentals=int(B * C),
                bytes_accessed=int(2 * B * C * HW * itemsize)),
        )(x_flat, w1t, b1r, w2t, b2r)
        return out_flat.reshape(B, C, H, W)

    # ------------------------- pass 1: pool (+ excite) -----------------------
    b_tile, c_tile_p, hw_tile_p = _pool_tiles(B, C, HW, itemsize, budget)
    if c_tile is not None:
        c_tile_p = c_tile
    if hw_tile_pool is not None:
        hw_tile_p = hw_tile_pool
    ragged = (HW % hw_tile_p) != 0
    num_hw_p = pl.cdiv(HW, hw_tile_p)

    pool_cost = pl.CostEstimate(
        flops=int(B * C * HW + 4 * B * C * Cr),
        transcendentals=int(B * C),
        bytes_accessed=int(B * C * HW * itemsize + B * C * 4))

    if c_tile_p >= C:
        # Common case: C untiled -> excitation MLP fused into the last
        # reduction step; batch-split 'parallel' axis feeds both TCs on v7x.
        num_b = pl.cdiv(B, b_tile)
        gate = pl.pallas_call(
            functools.partial(_se_pool_excite_kernel, hw_total=HW,
                              hw_tile=hw_tile_p, inv_hw=inv_hw, ragged=ragged),
            out_shape=jax.ShapeDtypeStruct((B, C, 1), jnp.float32),
            grid_spec=pltpu.PrefetchScalarGridSpec(
                num_scalar_prefetch=0,
                grid=(num_b, num_hw_p),
                in_specs=[
                    pl.BlockSpec((b_tile, C, hw_tile_p), lambda b, k: (b, 0, k)),
                    pl.BlockSpec((C, Cr), lambda b, k: (0, 0)),
                    pl.BlockSpec((1, Cr), lambda b, k: (0, 0)),
                    pl.BlockSpec((Cr, C), lambda b, k: (0, 0)),
                    pl.BlockSpec((1, C), lambda b, k: (0, 0)),
                ],
                out_specs=pl.BlockSpec((b_tile, C, 1), lambda b, k: (b, 0, 0)),
                scratch_shapes=[pltpu.VMEM((b_tile, C, hw_tile_p), jnp.float32)],
            ),
            compiler_params=pltpu.CompilerParams(
                dimension_semantics=("parallel", "arbitrary"),
                vmem_limit_bytes=vmem_limit),
            cost_estimate=pool_cost,
        )(x_flat, w1t, b1r, w2t, b2r)
    else:
        # Channel-tiled fallback for very large B*C: per-channel means first
        # ('parallel' C axis, 'arbitrary' reduction), tiny excite kernel after.
        num_c_p = pl.cdiv(C, c_tile_p)
        means = pl.pallas_call(
            functools.partial(_se_pool_mean_kernel, hw_total=HW,
                              hw_tile=hw_tile_p, inv_hw=inv_hw, ragged=ragged),
            out_shape=jax.ShapeDtypeStruct((B, C, 1), jnp.float32),
            grid_spec=pltpu.PrefetchScalarGridSpec(
                num_scalar_prefetch=0,
                grid=(num_c_p, num_hw_p),
                in_specs=[pl.BlockSpec((B, c_tile_p, hw_tile_p),
                                       lambda c, k: (0, c, k))],
                out_specs=pl.BlockSpec((B, c_tile_p, 1), lambda c, k: (0, c, 0)),
                scratch_shapes=[pltpu.VMEM((B, c_tile_p, hw_tile_p),
                                           jnp.float32)],
            ),
            compiler_params=pltpu.CompilerParams(
                dimension_semantics=("parallel", "arbitrary"),
                vmem_limit_bytes=vmem_limit),
            cost_estimate=pool_cost,
        )(x_flat)
        gate2d = pl.pallas_call(
            _se_excite_kernel,
            out_shape=jax.ShapeDtypeStruct((B, C), jnp.float32),
            compiler_params=pltpu.CompilerParams(vmem_limit_bytes=vmem_limit),
        )(means.reshape(B, C), w1t, b1r, w2t, b2r)
        gate = gate2d.reshape(B, C, 1)

    # ------------------------- pass 2: scale (streaming) ---------------------
    c_tile_s, hw_tile_s = _scale_tiles(B, C, HW, itemsize, budget)
    if c_tile is not None:
        c_tile_s = c_tile
    if hw_tile_scale is not None:
        hw_tile_s = hw_tile_scale
    num_c_s = pl.cdiv(C, c_tile_s)
    num_hw_s = pl.cdiv(HW, hw_tile_s)

    out_flat = pl.pallas_call(
        _se_scale_kernel,
        out_shape=jax.ShapeDtypeStruct((B, C, HW), x.dtype),
        grid_spec=pltpu.PrefetchScalarGridSpec(
            num_scalar_prefetch=0,
            grid=(num_c_s, num_hw_s),
            in_specs=[
                pl.BlockSpec((B, c_tile_s, 1), lambda c, j: (0, c, 0)),
                pl.BlockSpec((B, c_tile_s, hw_tile_s), lambda c, j: (0, c, j)),
            ],
            out_specs=pl.BlockSpec((B, c_tile_s, hw_tile_s),
                                   lambda c, j: (0, c, j)),
        ),
        compiler_params=pltpu.CompilerParams(
            dimension_semantics=("parallel", "parallel"),
            vmem_limit_bytes=vmem_limit),
        cost_estimate=pl.CostEstimate(
            flops=int(B * C * HW),
            transcendentals=0,
            bytes_accessed=int(2 * B * C * HW * itemsize + B * C * 4)),
    )(gate, x_flat)

    return out_flat.reshape(B, C, H, W)


# ---------------------------------------------------------------------------
# Pure-JAX reference (PyTorch parameter layout).
# ---------------------------------------------------------------------------
def se_block_reference(x_nchw, w1, b1, w2, b2):
    B, C, H, W = x_nchw.shape
    y = x_nchw.reshape(B, C, -1).mean(axis=2)
    y = jnp.maximum(y @ w1.T + b1, 0.0)
    y = jax.nn.sigmoid(y @ w2.T + b2)
    return x_nchw * y.reshape(B, C, 1, 1)


if __name__ == "__main__":
    key = jax.random.PRNGKey(0)
    kx1, kx2, kw1, kb1, kw2, kb2 = jax.random.split(key, 6)

    B, C, reduction = 2, 64, 16
    Cr = C // reduction

    # PyTorch nn.Linear layouts.
    w1 = jax.random.normal(kw1, (Cr, C), dtype=jnp.float32) * 0.1   # fc1.weight
    b1 = jax.random.normal(kb1, (Cr,), dtype=jnp.float32) * 0.1     # fc1.bias
    w2 = jax.random.normal(kw2, (C, Cr), dtype=jnp.float32) * 0.1   # fc2.weight
    b2 = jax.random.normal(kb2, (C,), dtype=jnp.float32) * 0.1      # fc2.bias

    # 1) Default dispatch: small activation -> fused single-kernel path.
    x1 = jax.random.normal(kx1, (B, C, 16, 16), dtype=jnp.float32)
    out1 = jax.block_until_ready(se_block(x1, w1, b1, w2, b2))
    ref1 = se_block_reference(x1, w1, b1, w2, b2)
    assert out1.shape == x1.shape
    assert jnp.allclose(out1, ref1, rtol=1e-3, atol=1e-3), "fused path mismatch"

    # 2) Two-pass path: multi-step 'arbitrary' reduction + ragged last tile +
    #    batch-split parallel axis.  (Tiles forced small ONLY for correctness
    #    coverage at this tiny shape; real shapes pick large lane-dense tiles.)
    x2 = jax.random.normal(kx2, (B, C, 20, 20), dtype=jnp.float32)   # HW=400
    ref2 = se_block_reference(x2, w1, b1, w2, b2)
    out2 = jax.block_until_ready(
        se_block(x2, w1, b1, w2, b2, force_two_pass=True,
                 hw_tile_pool=128, hw_tile_scale=128))
    assert jnp.allclose(out2, ref2, rtol=1e-3, atol=1e-3), "two-pass mismatch"

    # 3) Channel-tiled fallback (pool-mean + excite + scale kernels).
    out3 = jax.block_until_ready(
        se_block(x2, w1, b1, w2, b2, force_two_pass=True, c_tile=32,
                 hw_tile_pool=128, hw_tile_scale=128))
    assert jnp.allclose(out3, ref2, rtol=1e-3, atol=1e-3), "channel-tiled mismatch"

    # 4) bf16 activations (fused path, bf16 multiply fast path).
    x4 = x1.astype(jnp.bfloat16)
    out4 = jax.block_until_ready(se_block(x4, w1, b1, w2, b2))
    ref4 = se_block_reference(x4.astype(jnp.float32), w1, b1, w2, b2)
    assert out4.dtype == jnp.bfloat16
    assert jnp.allclose(out4.astype(jnp.float32), ref4, rtol=5e-2, atol=5e-2), \
        "bf16 path mismatch"

    print("KERNEL_OK")
</pallas_src>

<mosaic_0001>
module attributes {stable_mosaic.version = 11 : i64} {
  func.func @_se_fused_kernel(%arg0: memref<2x64x256xf32, #tpu.memory_space<vmem>>, %arg1: memref<64x4xf32, #tpu.memory_space<vmem>>, %arg2: memref<1x4xf32, #tpu.memory_space<vmem>>, %arg3: memref<4x64xf32, #tpu.memory_space<vmem>>, %arg4: memref<1x64xf32, #tpu.memory_space<vmem>>, %arg5: memref<2x64x256xf32, #tpu.memory_space<vmem>>) attributes {dimension_semantics = [], scalar_prefetch = 0 : i64, scratch_operands = 0 : i64, tpu.core_type = #tpu.core_type<tc>} {
    %c0 = arith.constant 0 : index
    %c0_0 = arith.constant 0 : index
    %c0_1 = arith.constant 0 : index
    %0 = vector.load %arg0[%c0, %c0_0, %c0_1] : memref<2x64x256xf32, #tpu.memory_space<vmem>>, vector<2x64x256xf32>
    %cst = arith.constant dense<0.000000e+00> : vector<2x64xf32>
    %1 = vector.multi_reduction <add>, %0, %cst [2] : vector<2x64x256xf32> to vector<2x64xf32>
    %cst_2 = arith.constant 3.906250e-03 : f32
    %2 = vector.broadcast %cst_2 : f32 to vector<2x64xf32>
    %3 = arith.mulf %1, %2 : vector<2x64xf32>
    %c0_3 = arith.constant 0 : index
    %c0_4 = arith.constant 0 : index
    %4 = vector.load %arg1[%c0_3, %c0_4] : memref<64x4xf32, #tpu.memory_space<vmem>>, vector<64x4xf32>
    %cst_5 = arith.constant dense<0.000000e+00> : vector<2x4xf32>
    %5 = tpu.matmul %3, %4, %cst_5 {dimension_numbers = #tpu.dot_dimension_numbers<[1], [0], [0], [1], [0, 0, 1, 1], [], []>} : vector<2x64xf32>, vector<64x4xf32>, vector<2x4xf32> -> vector<2x4xf32>
    %c0_6 = arith.constant 0 : index
    %c0_7 = arith.constant 0 : index
    %6 = vector.load %arg2[%c0_6, %c0_7] : memref<1x4xf32, #tpu.memory_space<vmem>>, vector<1x4xf32>
    %7 = vector.broadcast %6 : vector<1x4xf32> to vector<2x4xf32>
    %8 = arith.addf %5, %7 : vector<2x4xf32>
    %cst_8 = arith.constant 0.000000e+00 : f32
    %9 = vector.broadcast %cst_8 : f32 to vector<2x4xf32>
    %10 = arith.maximumf %8, %9 : vector<2x4xf32>
    %c0_9 = arith.constant 0 : index
    %c0_10 = arith.constant 0 : index
    %11 = vector.load %arg3[%c0_9, %c0_10] : memref<4x64xf32, #tpu.memory_space<vmem>>, vector<4x64xf32>
    %cst_11 = arith.constant dense<0.000000e+00> : vector<2x64xf32>
    %12 = tpu.matmul %10, %11, %cst_11 {dimension_numbers = #tpu.dot_dimension_numbers<[1], [0], [0], [1], [0, 0, 1, 1], [], []>} : vector<2x4xf32>, vector<4x64xf32>, vector<2x64xf32> -> vector<2x64xf32>
    %c0_12 = arith.constant 0 : index
    %c0_13 = arith.constant 0 : index
    %13 = vector.load %arg4[%c0_12, %c0_13] : memref<1x64xf32, #tpu.memory_space<vmem>>, vector<1x64xf32>
    %14 = vector.broadcast %13 : vector<1x64xf32> to vector<2x64xf32>
    %15 = arith.addf %12, %14 : vector<2x64xf32>
    %16 = arith.negf %15 : vector<2x64xf32>
    %17 = math.exp %16 : vector<2x64xf32>
    %cst_14 = arith.constant 1.000000e+00 : f32
    %18 = vector.broadcast %cst_14 : f32 to vector<2x64xf32>
    %19 = arith.addf %18, %17 : vector<2x64xf32>
    %20 = arith.divf %18, %19 : vector<2x64xf32>
    %21 = vector.shape_cast %20 : vector<2x64xf32> to vector<2x64x1xf32>
    %22 = vector.broadcast %21 : vector<2x64x1xf32> to vector<2x64x256xf32>
    %23 = arith.mulf %0, %22 : vector<2x64x256xf32>
    %c0_15 = arith.constant 0 : index
    %c0_16 = arith.constant 0 : index
    %c0_17 = arith.constant 0 : index
    %24 = vector.load %arg5[%c0_15, %c0_16, %c0_17] : memref<2x64x256xf32, #tpu.memory_space<vmem>>, vector<2x64x256xf32>
    tpu.vector_store %arg5[%c0_15, %c0_16, %c0_17], %23 {strides = array<i32>} : memref<2x64x256xf32, #tpu.memory_space<vmem>>, vector<2x64x256xf32>,
    return
  }
}

</mosaic_0001>

<bundles_post_ra>
// kernel: tpu_custom_call.1
= control target key start
LH: loop header
LB: loop body
LE: loop exit
PB: predicated region body
PF: predicated region fallthrough
CT: control target
= control target key end

     0   :  { %10 = vsyncpa [#allocation3], 0  ;;  %s766_s0 = inlined_call_operand.hbm [shape: f32[2,64,256], index: 0, kind: input, shape index: {}]   ;;  %s767_s1 = inlined_call_operand.vmem [shape: f32[64,4], index: 1, kind: input, shape index: {}]   ;;  %s768_s2 = inlined_call_operand.vmem [shape: f32[1,4], index: 2, kind: input, shape index: {}]   ;;  %s769_s3 = inlined_call_operand.vmem [shape: f32[4,64], index: 3, kind: input, shape index: {}]   ;;  %s770_s4 = inlined_call_operand.vmem [shape: f32[1,64], index: 4, kind: input, shape index: {}]   ;;  %s771_s5 = inlined_call_operand.hbm [shape: f32[2,64,256], index: 5, kind: output, shape index: {}]  }
   0x1   :  { %11 = vsyncpa [#allocation4], 0  ;;  %s16_s20 = sshll.u32 %s766_s0, 4  ;;  %s549_s21 = smov [#allocation2]   ;;  %s17_s20 = int_to_ptr.hbm [resolvable:$true] %s16_s20 }
   0x2   :  { %s18_s22 = sshll.u32 %s549_s21, 4  ;;  %s550_s23 = smov 256   ;;  %s19_s22 = int_to_ptr.vmem [resolvable:$true] %s18_s22 }
   0x3   :  { %s551_s24 = smov 16  }
   0x4   :  { %24 = dma.hbm_to_vmem [thread:$0]  %s17_s20, 4096, %s19_s22, [#allocation3], %s550_s23, %s550_s23, %s551_s24  }
   0x5   :  { %545 = dma.done.wait [#allocation3], 4096  }
   0x6   :  { %546 = vsyncadd [#allocation3], 4294963200  ;;  %v589_v0 = vld [vmem:[#allocation2 + $0x80] sm:$0xff]  ;;  %v591_v1 = vld [vmem:[#allocation2 + $0x88] sm:$0xff]  ;;  %vm166_vm0 = vcmask 130112   ;;  %vm170_vm1 = vcmask 195712  }
   0x7   :  { %v593_v2 = vld [vmem:[#allocation2] sm:$0xff]  ;;  %v93_v3 = vadd.f32 %v591_v1, %v589_v0  ;;  %v597_v4 = vld [vmem:[#allocation2 + $0x8] sm:$0xff]  ;;  %v607_v9 = vld [vmem:[#allocation2 + $0x90] sm:$0xff]  ;;  %vm174_vm2 = vcmask 261312   ;;  %vm178_vm3 = vcmask 326912   ;;  %vm182_vm4 = vcmask 392512  }
   0x8   :  { %v599_v5 = vld [vmem:[#allocation2 + $0x20] sm:$0xff]  ;;  %v601_v6 = vld [vmem:[#allocation2 + $0x28] sm:$0xff]  ;;  %v69_v7 = vadd.f32 %v597_v4, %v593_v2  ;;  %v609_v10 = vld [vmem:[#allocation2 + $0x98] sm:$0xff]  ;;  %vm186_vm5 = vcmask 458112   ;;  %vm190_vm6 = vcmask 523712   ;;  %vm207_vm7 = vcmask 1041409  }
   0x9   :  { %v75_v8 = vadd.f32 %v601_v6, %v599_v5  ;;  %94 = vadd.xlane.f32.xlu1 %v93_v3  ;;  %v611_v11 = vld [vmem:[#allocation2 + $0x10] sm:$0xff]  ;;  %v613_v12 = vld [vmem:[#allocation2 + $0x18] sm:$0xff]  ;;  %v615_v13 = vld [vmem:[#allocation2 + $0xa0] sm:$0xff]  ;;  %v96_v15 = vadd.f32 %v609_v10, %v607_v9  ;;  %vm209_vm8 = vcmask 523264   ;;  %vm242_vm9 = vcmask 1043456   ;;  %s453_s21 = sshll.u32 %s771_s5, 4  ;;  %s454_s21 = int_to_ptr.hbm [resolvable:$true] %s453_s21 }
   0xa   :  { %70 = vadd.xlane.f32.xlu0 %v69_v7  ;;  %v617_v14 = vld [vmem:[#allocation2 + $0xa8] sm:$0xff]  ;;  %v72_v16 = vadd.f32 %v613_v12, %v611_v11  ;;  %v625_v18 = vld [vmem:[#allocation2 + $0xb0] sm:$0xff]  ;;  %v627_v19 = vld [vmem:[#allocation2 + $0xb8] sm:$0xff]  ;;  %v772_v7 = vlaneseq  ;;  %vm238_vm10 = vcmask 31744  }
   0xb   :  { %76 = vadd.xlane.f32.xlu2 %v75_v8  ;;  %v99_v17 = vadd.f32 %v617_v14, %v615_v13  ;;  %v629_v20 = vld [vmem:[#allocation2 + $0x30] sm:$0xff]  ;;  %v631_v21 = vld [vmem:[#allocation2 + $0x38] sm:$0xff]  ;;  %v633_v22 = vld [vmem:[#allocation2 + $0x40] sm:$0xff]  ;;  %v102_v24 = vadd.f32 %v627_v19, %v625_v18 }
   0xc   :  { %v635_v23 = vld [vmem:[#allocation2 + $0x48] sm:$0xff]  ;;  %v78_v25 = vadd.f32 %v631_v21, %v629_v20  ;;  %v643_v27 = vld [vmem:[#allocation2 + $0x50] sm:$0xff]  ;;  %v645_v28 = vld [vmem:[#allocation2 + $0x58] sm:$0xff]  ;;  %v162_v8 = vand.u32 127, %v772_v7 }
   0xd   :  { %v81_v26 = vadd.f32 %v635_v23, %v633_v22  ;;  %v647_v29 = vld [vmem:[#allocation2 + $0xc0] sm:$0xff]  ;;  %v649_v30 = vld [vmem:[#allocation2 + $0xc8] sm:$0xff]  ;;  %v651_v31 = vld [vmem:[#allocation2 + $0xd0] sm:$0xff]  ;;  %v84_v33 = vadd.f32 %v645_v28, %v643_v27 }
   0xe   :  { %775 = vst [vmem:[#allocation8_spill] sm:$0xff] %v651_v31  ;;  %v653_v32 = vld [vmem:[#allocation2 + $0xd8] sm:$0xff]  ;;  %v105_v34 = vadd.f32 %v649_v30, %v647_v29  ;;  %v661_v36 = vld [vmem:[#allocation2 + $0xe0] sm:$0xff]  ;;  %v663_v37 = vld [vmem:[#allocation2 + $0xe8] sm:$0xff] }
   0xf   :  { %776 = vst [vmem:[#allocation9_spill] sm:$0xff] %v653_v32  ;;  %v108_v35 = vadd.f32 %v653_v32, %v651_v31  ;;  %v665_v38 = vld [vmem:[#allocation2 + $0x60] sm:$0xff]  ;;  %v667_v39 = vld [vmem:[#allocation2 + $0x68] sm:$0xff]  ;;  %v669_v40 = vld [vmem:[#allocation2 + $0x70] sm:$0xff]  ;;  %v111_v42 = vadd.f32 %v663_v37, %v661_v36 }
  0x10   :  { %v671_v41 = vld [vmem:[#allocation2 + $0x78] sm:$0xff]  ;;  %v87_v43 = vadd.f32 %v667_v39, %v665_v38  ;;  %v679_v45 = vld [vmem:[#allocation2 + $0xf0] sm:$0xff]  ;;  %v138_v53 = vld [vmem:[%s767_s1 + $0x28] sm:$0xff] }
  0x11   :  { %97 = vadd.xlane.f32.xlu1 %v96_v15  ;;  %v90_v44 = vadd.f32 %v671_v41, %v669_v40  ;;  %v681_v46 = vld [vmem:[#allocation2 + $0xf8] sm:$0xff]  ;;  %v139_v52 = vld [vmem:[%s767_s1 + $0x30] sm:$0xff]  ;;  %v137_v54 = vld [vmem:[%s767_s1 + $0x20] sm:$0xff] }
  0x12   :  { %73 = vadd.xlane.f32.xlu0 %v72_v16  ;;  %v114_v47 = vadd.f32 %v681_v46, %v679_v45  ;;  %v140_v48 = vld [vmem:[%s767_s1 + $0x38] sm:$0xff]  ;;  %v135_v59 = vld [vmem:[%s767_s1 + $0x10] sm:$0xff]  ;;  %v134_v60 = vld [vmem:[%s767_s1 + $0x8] sm:$0xff] }
  0x13   :  { %100 = vadd.xlane.f32.xlu2 %v99_v17  ;;  %220 = vmatpush.msra.mxu0 %v140_v48  ;;  %v136_v55 = vld [vmem:[%s767_s1 + $0x18] sm:$0xff]  ;;  %v133_v61 = vld [vmem:[%s767_s1] sm:$0xff] }
  0x15   :  { %221 = vmatpush.msra.mxu0 %v139_v52 }
  0x17   :  { %222 = vmatpush.msra.mxu0 %v138_v53 }
  0x19   :  { %103 = vadd.xlane.f32.xlu1 %v102_v24  ;;  %223 = vmatpush.msra.mxu0 %v137_v54  ;;  %v164_v24 = vadd.s32 4294967288, %v162_v8 }
  0x1a   :  { %79 = vadd.xlane.f32.xlu0 %v78_v25 }
  0x1b   :  { %82 = vadd.xlane.f32.xlu2 %v81_v26  ;;  %224 = vmatpush.msra.mxu0 %v136_v55 }
  0x1d   :  { %225 = vmatpush.msra.mxu0 %v135_v59 }
  0x1f   :  { %226 = vmatpush.msra.mxu0 %v134_v60  ;;  %v176_v60 = vadd.s32 4294967264, %v162_v8 }
  0x21   :  { %85 = vadd.xlane.f32.xlu1 %v84_v33  ;;  %227 = vmatpush.msra.mxu0 %v133_v61 }
  0x22   :  { %106 = vadd.xlane.f32.xlu0 %v105_v34 }
  0x23   :  { %109 = vadd.xlane.f32.xlu2 %v108_v35  ;;  %v168_v35 = vadd.s32 4294967280, %v162_v8 }
  0x29   :  { %112 = vadd.xlane.f32.xlu1 %v111_v42 }
  0x2a   :  { %88 = vadd.xlane.f32.xlu0 %v87_v43 }
  0x2b   :  { %91 = vadd.xlane.f32.xlu2 %v90_v44  ;;  %v172_v44 = vadd.s32 4294967272, %v162_v8 }
  0x32   :  { %115 = vadd.xlane.f32.xlu0 %v114_v47 }
  0x7c   :  { %v95_v49 = vpop.xlane.xlu1 %94 }
  0x7d   :  { %v71_v50 = vpop.xlane.xlu0 %70  ;;  %v125_v26 = vmul.f32 0.00390625, %v95_v49 }
  0x7e   :  { %v77_v51 = vpop.xlane.xlu2 %76  ;;  %v117_v33 = vmul.f32 0.00390625, %v71_v50 }
  0x7f   :  { %v119_v42 = vmul.f32 0.00390625, %v77_v51  ;;  %v192_v52 = vperm.slane %v125_v26, %v162_v8 }
  0x80   :  { %v163_v53 = vperm.slane %v117_v33, %v162_v8 }
  0x81   :  { %v169_v59 = vperm.slane %v119_v42, %v168_v35 }
  0x84   :  { %v98_v56 = vpop.xlane.xlu1 %97 }
  0x85   :  { %v74_v57 = vpop.xlane.xlu0 %73  ;;  %v126_v34 = vmul.f32 0.00390625, %v98_v56  ;;  %v180_v56 = vadd.s32 4294967256, %v162_v8 }
  0x86   :  { %v101_v58 = vpop.xlane.xlu2 %100  ;;  %v118_v25 = vmul.f32 0.00390625, %v74_v57 }
  0x87   :  { %v127_v48 = vmul.f32 0.00390625, %v101_v58  ;;  %v193_v54 = vperm.slane %v126_v34, %v164_v24 }
  0x88   :  { %v165_v43 = vperm.slane %v118_v25, %v164_v24 }
  0x89   :  { %v195_v32 = vperm.slane %v127_v48, %v168_v35  ;;  %v194_v26 = vsel %vm166_vm0, %v193_v54, %v192_v52 }
  0x8a   :  { %v167_v49 = vsel %vm166_vm0, %v165_v43, %v163_v53 }
  0x8b   :  { %v196_v35 = vsel %vm170_vm1, %v195_v32, %v194_v26  ;;  %v777_v26 = vlaneseq }
  0x8c   :  { %v104_v62 = vpop.xlane.xlu1 %103 }
  0x8d   :  { %v80_v63 = vpop.xlane.xlu0 %79  ;;  %v128_v55 = vmul.f32 0.00390625, %v104_v62 }
  0x8e   :  { %v83_v3 = vpop.xlane.xlu2 %82  ;;  %v120_v47 = vmul.f32 0.00390625, %v80_v63  ;;  %v184_v63 = vadd.s32 4294967248, %v162_v8 }
  0x8f   :  { %v121_v61 = vmul.f32 0.00390625, %v83_v3  ;;  %v197_v24 = vperm.slane %v128_v55, %v172_v44  ;;  %v171_v3 = vsel %vm170_vm1, %v169_v59, %v167_v49 }
  0x90   :  { %v173_v50 = vperm.slane %v120_v47, %v172_v44 }
  0x91   :  { %v198_v53 = vsel %vm174_vm2, %v197_v24, %v196_v35  ;;  %v287_v24 = vshrl.u32 %v777_v26, 7 }
  0x92   :  { %v175_v42 = vsel %vm174_vm2, %v173_v50, %v171_v3 }
  0x93   :  { %474 = vset.pattern.permute.xlu1 %v287_v24  ;;  %v294_v3 = vadd.s32 8, %v287_v24 }
  0x94   :  { %v86_v15 = vpop.xlane.xlu1 %85 }
  0x95   :  { %v107_v16 = vpop.xlane.xlu0 %106  ;;  %v122_v51 = vmul.f32 0.00390625, %v86_v15  ;;  %v188_v15 = vadd.s32 4294967240, %v162_v8  ;;  %475 = vset.pattern.permute.xlu2 %v294_v3 }
  0x96   :  { %v110_v17 = vpop.xlane.xlu2 %109  ;;  %v129_v7 = vmul.f32 0.00390625, %v107_v16  ;;  %v177_v16 = vperm.slane %v121_v61, %v176_v60 }
  0x97   :  { %v130_v62 = vmul.f32 0.00390625, %v110_v17  ;;  %v181_v43 = vperm.slane %v122_v51, %v180_v56  ;;  %v491_v51 = vld [vmem:[%s768_s2] ss:$0 sm:$0xff]  ;;  %s552_s2 = smov [#allocation5]  }
  0x98   :  { %v199_v33 = vperm.slane %v129_v7, %v176_v60  ;;  %v179_v17 = vsel %vm178_vm3, %v177_v16, %v175_v42  ;;  %v492_v16 = vld [vmem:[%s770_s4] ss:$0 sm:$0xff]  ;;  %s451_s4 = sshll.u32 %s552_s2, 4  ;;  %s452_s4 = int_to_ptr.vmem [resolvable:$true] %s451_s4 }
  0x99   :  { %v201_v52 = vperm.slane %v130_v62, %v180_v56  ;;  %v183_v55 = vsel %vm182_vm4, %v181_v43, %v179_v17  ;;  %v233_v56 = vld [vmem:[%s769_s3] sm:$0xf]  ;;  %v300_v62 = vadd.s32 16, %v287_v24 }
  0x9a   :  { %v200_v44 = vsel %vm178_vm3, %v199_v33, %v198_v53  ;;  %467 = vmatpush.msk.msra.mxu1 %vm242_vm9, %v233_v56 }
  0x9b   :  { %v202_v8 = vsel %vm182_vm4, %v201_v52, %v200_v44  ;;  %476 = vset.pattern.permute.xlu0 %v300_v62 }
  0x9c   :  { %v113_v25 = vpop.xlane.xlu1 %112 }
  0x9d   :  { %v89_v57 = vpop.xlane.xlu0 %88  ;;  %v131_v34 = vmul.f32 0.00390625, %v113_v25 }
  0x9e   :  { %v123_v31 = vmul.f32 0.00390625, %v89_v57  ;;  %v92_v58 = vpop.xlane.xlu2 %91 }
  0x9f   :  { %v124_v47 = vmul.f32 0.00390625, %v92_v58  ;;  %v203_v54 = vperm.slane %v131_v34, %v184_v63 }
  0xa0   :  { %v185_v48 = vperm.slane %v123_v31, %v184_v63 }
  0xa1   :  { %v189_v59 = vperm.slane %v124_v47, %v188_v15  ;;  %v204_v32 = vsel %vm186_vm5, %v203_v54, %v202_v8 }
  0xa2   :  { %v187_v61 = vsel %vm186_vm5, %v185_v48, %v183_v55 }
  0xa3   :  { %v191_v31 = vsel %vm190_vm6, %v189_v59, %v187_v61  ;;  %v312_v61 = vadd.s32 32, %v287_v24 }
  0xa5   :  { %v116_v7 = vpop.xlane.xlu0 %115 }
  0xa6   :  { %v132_v60 = vmul.f32 0.00390625, %v116_v7 }
  0xa8   :  { %v205_v57 = vperm.slane %v132_v60, %v188_v15  ;;  %v306_v60 = vadd.s32 24, %v287_v24 }
  0xaa   :  { %v206_v49 = vsel %vm190_vm6, %v205_v57, %v204_v32  ;;  %v324_v57 = vadd.s32 48, %v287_v24  ;;  %v318_v32 = vadd.s32 40, %v287_v24 }
  0xab   :  { %v208_v50 = vsel %vm207_vm7, %v206_v49, %v191_v31  ;;  %v330_v31 = vadd.s32 56, %v287_v24 }
  0xac   :  { %466 = vmatmul.msk.f32.vlgmr.msra.gmra.mxu0 %vm209_vm8, %v208_v50 }
 0x129   :  { %v229_v25 = vpop.f32.mrf.mxu0 }
 0x12a   :  { %v230_v63 = vadd.f32 %v491_v51, %v229_v25 }
 0x12c   :  { %v232_v58 = vmax.f32 %v230_v63, 0.0 }
 0x12e   :  { %468 = vmatmul.msk.f32.vlgmr.msra.gmra.mxu1 %vm238_vm10, %v232_v58 }
 0x1ab   :  { %v263_v33 = vpop.f32.mrf.mxu1 }
 0x1ac   :  { %v264_v34 = vadd.f32 %v492_v16, %v263_v33 }
 0x1ae   :  { %v469_v42 = vmul.f32 -1.442695, %v264_v34 }
 0x1b0   :  { %493 = vpow2.f32 %v469_v42 }
 0x1b6   :  { %v494_v43 = vpop.eup %493 }
 0x1b7   :  { %v269_v15 = vadd.f32 1.0, %v494_v43 }
 0x1b9   :  { %495 = vrcp.f32 %v269_v15  ;;  %v281_v53 = vand.u32 2147483648, %v269_v15  ;;  %v279_v17 = vand.u32 2147483647, %v269_v15  ;;  %vm275_vm12 = vweird.f32 %v269_v15 }
 0x1bb   :  { %v282_v54 = vor.u32 1.1754944e-38, %v281_v53  ;;  %vm280_vm14 = vcmp.eq.f32.partialorder %v279_v17, 8.507059e+37 }
 0x1bf   :  { %v496_v47 = vpop.eup %495 }
 0x1c0   :  { %v271_v35 = vmul.f32 %v496_v47, %v269_v15  ;;  %vm276_vm11 = vweird.f32 %v496_v47 }
 0x1c1   :  { %vm277_vm13 = vmor %vm275_vm12, %vm276_vm11 }
 0x1c2   :  { %v272_v48 = vsub.f32 1.0, %v271_v35 }
 0x1c4   :  { %v273_v52 = vmul.f32 %v496_v47, %v272_v48 }
 0x1c6   :  { %v274_v44 = vadd.f32 %v496_v47, %v273_v52  ;;  %v779_v52 = vld [vmem:[#allocation9_spill] sm:$0xff] }
 0x1c8   :  { %v278_v7 = vsel %vm277_vm13, %v496_v47, %v274_v44 }
 0x1c9   :  { %v283_v55 = vsel %vm280_vm14, %v282_v54, %v278_v7 }
 0x1ca   :  { %v285_v59 = vperm.slane %v283_v55, 0  ;;  %v334_v8 = vperm.slane %v283_v55, 1 }
 0x1cc   :  { %302 = vperm.xlu0 %476, %v285_v59   ;;  %296 = vperm.xlu2 %475, %v285_v59  }
 0x1cd   :  { %290 = vperm.xlu1 %474, %v285_v59  }
 0x1d4   :  { %483 = vset.pattern.permute.xlu0 %v294_v3  ;;  %477 = vset.pattern.permute.xlu2 %v306_v60 }
 0x1d5   :  { %478 = vset.pattern.permute.xlu1 %v312_v61 }
 0x1dc   :  { %345 = vperm.xlu0 %483, %v334_v8   ;;  %308 = vperm.xlu2 %477, %v285_v59  }
 0x1dd   :  { %314 = vperm.xlu1 %478, %v285_v59  }
 0x1e4   :  { %488 = vset.pattern.permute.xlu0 %v324_v57  ;;  %479 = vset.pattern.permute.xlu2 %v318_v32 }
 0x1e5   :  { %480 = vset.pattern.permute.xlu1 %v324_v57 }
 0x1ec   :  { %375 = vperm.xlu0 %488, %v334_v8   ;;  %320 = vperm.xlu2 %479, %v285_v59  }
 0x1ed   :  { %326 = vperm.xlu1 %480, %v285_v59  }
 0x1f4   :  { %481 = vset.pattern.permute.xlu2 %v330_v31  ;;  %490 = vset.pattern.permute.xlu0 %v330_v31 }
 0x1f5   :  { %482 = vset.pattern.permute.xlu1 %v287_v24 }
 0x1fc   :  { %332 = vperm.xlu2 %481, %v285_v59  }
 0x1fd   :  { %339 = vperm.xlu1 %482, %v334_v8  }
 0x204   :  { %484 = vset.pattern.permute.xlu2 %v300_v62 }
 0x205   :  { %485 = vset.pattern.permute.xlu1 %v306_v60 }
 0x20c   :  { %351 = vperm.xlu2 %484, %v334_v8  }
 0x20d   :  { %357 = vperm.xlu1 %485, %v334_v8  }
 0x214   :  { %486 = vset.pattern.permute.xlu2 %v312_v61 }
 0x215   :  { %487 = vset.pattern.permute.xlu1 %v318_v32 }
 0x21c   :  { %363 = vperm.xlu2 %486, %v334_v8  }
 0x21d   :  { %369 = vperm.xlu1 %487, %v334_v8  }
 0x224   :  { %489 = vset.pattern.permute.xlu2 %v330_v31 }
 0x226   :  { %v297_v49 = vpop.permute.xlu2 %296 }
 0x227   :  { %v385_v50 = vmul.f32 %v297_v49, %v611_v11  ;;  %v386_v56 = vmul.f32 %v297_v49, %v613_v12 }
 0x229   :  { %417 = vst [vmem:[#allocation5 + $0x10] sm:$0xff] %v385_v50 }
 0x22a   :  { %418 = vst [vmem:[#allocation5 + $0x18] sm:$0xff] %v386_v56 }
 0x22c   :  { %381 = vperm.xlu2 %489, %v334_v8  }
 0x236   :  { %v309_v51 = vpop.permute.xlu2 %308 }
 0x237   :  { %v389_v25 = vmul.f32 %v309_v51, %v629_v20  ;;  %v390_v63 = vmul.f32 %v309_v51, %v631_v21 }
 0x239   :  { %421 = vst [vmem:[#allocation5 + $0x30] sm:$0xff] %v389_v25 }
 0x23a   :  { %422 = vst [vmem:[#allocation5 + $0x38] sm:$0xff] %v390_v63 }
 0x23e   :  { %v303_v58 = vpop.permute.xlu0 %302 }
 0x23f   :  { %v387_v26 = vmul.f32 %v303_v58, %v599_v5  ;;  %v388_v24 = vmul.f32 %v303_v58, %v601_v6  ;;  %v291_v62 = vpop.permute.xlu1 %290 }
 0x240   :  { %v383_v11 = vmul.f32 %v291_v62, %v593_v2  ;;  %v384_v12 = vmul.f32 %v291_v62, %v597_v4 }
 0x241   :  { %419 = vst [vmem:[#allocation5 + $0x20] sm:$0xff] %v387_v26 }
 0x242   :  { %420 = vst [vmem:[#allocation5 + $0x28] sm:$0xff] %v388_v24 }
 0x243   :  { %415 = vst [vmem:[#allocation5] sm:$0xff] %v383_v11 }
 0x244   :  { %416 = vst [vmem:[#allocation5 + $0x8] sm:$0xff] %v384_v12 }
 0x246   :  { %v321_v3 = vpop.permute.xlu2 %320 }
 0x247   :  { %v393_v20 = vmul.f32 %v321_v3, %v643_v27  ;;  %v394_v21 = vmul.f32 %v321_v3, %v645_v28 }
 0x249   :  { %425 = vst [vmem:[#allocation5 + $0x50] sm:$0xff] %v393_v20 }
 0x24a   :  { %426 = vst [vmem:[#allocation5 + $0x58] sm:$0xff] %v394_v21 }
 0x24e   :  { %v346_v16 = vpop.permute.xlu0 %345 }
 0x24f   :  { %v401_v5 = vmul.f32 %v346_v16, %v607_v9  ;;  %v402_v6 = vmul.f32 %v346_v16, %v609_v10  ;;  %v315_v33 = vpop.permute.xlu1 %314 }
 0x250   :  { %v391_v2 = vmul.f32 %v315_v33, %v633_v22  ;;  %v392_v4 = vmul.f32 %v315_v33, %v635_v23 }
 0x251   :  { %433 = vst [vmem:[#allocation5 + $0x90] sm:$0xff] %v401_v5 }
 0x252   :  { %434 = vst [vmem:[#allocation5 + $0x98] sm:$0xff] %v402_v6 }
 0x253   :  { %423 = vst [vmem:[#allocation5 + $0x40] sm:$0xff] %v391_v2 }
 0x254   :  { %424 = vst [vmem:[#allocation5 + $0x48] sm:$0xff] %v392_v4 }
 0x256   :  { %v333_v34 = vpop.permute.xlu2 %332 }
 0x257   :  { %v397_v27 = vmul.f32 %v333_v34, %v669_v40  ;;  %v398_v28 = vmul.f32 %v333_v34, %v671_v41 }
 0x259   :  { %429 = vst [vmem:[#allocation5 + $0x70] sm:$0xff] %v397_v27 }
 0x25a   :  { %430 = vst [vmem:[#allocation5 + $0x78] sm:$0xff] %v398_v28 }
 0x25e   :  { %v376_v42 = vpop.permute.xlu0 %375 }
 0x25f   :  { %v411_v9 = vmul.f32 %v376_v42, %v661_v36  ;;  %v412_v10 = vmul.f32 %v376_v42, %v663_v37  ;;  %v327_v43 = vpop.permute.xlu1 %326 }
 0x260   :  { %v395_v22 = vmul.f32 %v327_v43, %v665_v38  ;;  %v396_v23 = vmul.f32 %v327_v43, %v667_v39 }
 0x261   :  { %443 = vst [vmem:[#allocation5 + $0xe0] sm:$0xff] %v411_v9 }
 0x262   :  { %444 = vst [vmem:[#allocation5 + $0xe8] sm:$0xff] %v412_v10 }
 0x263   :  { %427 = vst [vmem:[#allocation5 + $0x60] sm:$0xff] %v395_v22 }
 0x264   :  { %428 = vst [vmem:[#allocation5 + $0x68] sm:$0xff] %v396_v23 }
 0x266   :  { %v352_v15 = vpop.permute.xlu2 %351 }
 0x267   :  { %v403_v40 = vmul.f32 %v352_v15, %v615_v13  ;;  %v404_v41 = vmul.f32 %v352_v15, %v617_v14 }
 0x269   :  { %435 = vst [vmem:[#allocation5 + $0xa0] sm:$0xff] %v403_v40 }
 0x26a   :  { %436 = vst [vmem:[#allocation5 + $0xa8] sm:$0xff] %v404_v41 }
 0x26f   :  { %v340_v47 = vpop.permute.xlu1 %339 }
 0x270   :  { %v399_v36 = vmul.f32 %v340_v47, %v589_v0  ;;  %v400_v37 = vmul.f32 %v340_v47, %v591_v1 }
 0x272   :  { %431 = vst [vmem:[#allocation5 + $0x80] sm:$0xff] %v399_v36 }
 0x273   :  { %432 = vst [vmem:[#allocation5 + $0x88] sm:$0xff] %v400_v37 }
 0x276   :  { %v364_v38 = vpop.permute.xlu2 %363 }
 0x277   :  { %v407_v39 = vmul.f32 %v364_v38, %v647_v29  ;;  %v408_v35 = vmul.f32 %v364_v38, %v649_v30  ;;  %v778_v30 = vld [vmem:[#allocation8_spill] sm:$0xff] }
 0x279   :  { %439 = vst [vmem:[#allocation5 + $0xc0] sm:$0xff] %v407_v39 }
 0x27a   :  { %440 = vst [vmem:[#allocation5 + $0xc8] sm:$0xff] %v408_v35 }
 0x27f   :  { %v358_v48 = vpop.permute.xlu1 %357 }
 0x280   :  { %v405_v13 = vmul.f32 %v358_v48, %v625_v18  ;;  %v406_v14 = vmul.f32 %v358_v48, %v627_v19 }
 0x282   :  { %437 = vst [vmem:[#allocation5 + $0xb0] sm:$0xff] %v405_v13 }
 0x283   :  { %438 = vst [vmem:[#allocation5 + $0xb8] sm:$0xff] %v406_v14 }
 0x286   :  { %v382_v53 = vpop.permute.xlu2 %381 }
 0x287   :  { %v413_v0 = vmul.f32 %v382_v53, %v679_v45  ;;  %v414_v1 = vmul.f32 %v382_v53, %v681_v46 }
 0x289   :  { %445 = vst [vmem:[#allocation5 + $0xf0] sm:$0xff] %v413_v0 }
 0x28a   :  { %446 = vst [vmem:[#allocation5 + $0xf8] sm:$0xff] %v414_v1 }
 0x28f   :  { %v370_v29 = vpop.permute.xlu1 %369 }
 0x290   :  { %v409_v18 = vmul.f32 %v370_v29, %v778_v30  ;;  %v410_v19 = vmul.f32 %v370_v29, %v779_v52 }
 0x292   :  { %441 = vst [vmem:[#allocation5 + $0xd0] sm:$0xff] %v409_v18 }
 0x293   :  { %442 = vst [vmem:[#allocation5 + $0xd8] sm:$0xff] %v410_v19 }
 0x294   :  { %459 = dma.vmem_to_hbm [thread:$0]  %s452_s4, 4096, %s454_s21, [#allocation4], %s550_s23, %s550_s23, %s551_s24  }
 0x295   :  { %547 = dma.done.wait [#allocation4], 4096  }
 0x296   :  { %548 = vsyncadd [#allocation4], 4294963200 }
 0x297   :  { %464 = vsyncpa [#allocation3], 1 }
 0x298   :  { %465 = vsyncpa [#allocation4], 1 }

</bundles_post_ra>
